<compile_context>
chip_gen: v7x
topology: tpu7x:2x2x1
jax: 0.10.0
libtpu: 0.0.40
codegen_flags: <defaults>
</compile_context>

<pallas_src>
import functools

import jax
import jax.numpy as jnp
from jax.experimental import pallas as pl
from jax.experimental.pallas import tpu as pltpu


BN_EPS = 1e-5
LANE = 128


def _round_up(n, m):
    return ((n + m - 1) // m) * m


def _pad_2d(a, rows, cols, value=0.0):
    return jnp.pad(
        a, ((0, rows - a.shape[0]), (0, cols - a.shape[1])),
        constant_values=value,
    )


def _vmem_limit_bytes(footprint_bytes):
    """Generation-aware VMEM limit.

    Enough for the kernel's working set plus pipelining slack, but never the
    entire physical VMEM (leave headroom for compiler-internal scratch):
    v7x has 64 MiB/TC, v5e/v6e have 128 MiB.
    """
    try:
        capacity = int(pltpu.get_tpu_info().vmem_capacity_bytes)
    except Exception:
        capacity = 64 * 1024 * 1024          # conservative (v7x) fallback
    headroom = 16 * 1024 * 1024
    want = max(2 * footprint_bytes + (4 << 20), 32 * 1024 * 1024)
    return int(max(min(want, capacity - headroom), 16 * 1024 * 1024))


def _make_fused_mlp_kernel(batch, dims_p):
    """Fused kernel for len(dims_p)-2 DenseBlocks + final Linear.

    Layer i maps dims_p[i] -> dims_p[i+1] (padded dims).  Weight matrices are
    HBM refs streamed into a 2-slot VMEM scratch (double-buffered); x, the
    small per-layer params (bias/gamma/beta) and the output live in VMEM.
    """
    num_layers = len(dims_p) - 1             # num_blocks + 1 (final Linear)
    num_blocks = num_layers - 1
    n_small = 3 * num_blocks + 1
    inv_batch = 1.0 / float(batch)

    def kernel(*refs):
        x_ref = refs[0]
        w_refs = refs[1:1 + num_layers]                       # HBM (pl.ANY)
        small = refs[1 + num_layers:1 + num_layers + n_small]  # VMEM
        o_ref = refs[1 + num_layers + n_small]
        wbuf, sem = refs[-2], refs[-1]                        # scratch

        def w_copy(i, slot):
            din, dout = dims_p[i], dims_p[i + 1]
            return pltpu.make_async_copy(
                w_refs[i], wbuf.at[slot, :din, :dout], sem.at[slot])

        # Prime slot 0 with layer 0's weights.
        w_copy(0, 0).start()

        h = x_ref[...]                                        # (B, d0) f32
        for i in range(num_blocks):
            slot = i % 2
            w_copy(i, slot).wait()
            if i + 1 < num_layers:
                # Prefetch the next layer's weights into the other slot so the
                # DMA overlaps this layer's MXU matmul + BN epilogue.
                w_copy(i + 1, 1 - slot).start()

            din, dout = dims_p[i], dims_p[i + 1]
            b, gamma, beta = small[3 * i:3 * i + 3]
            w = wbuf[slot, :din, :dout]                       # bf16 tile
            # MXU matmul: bf16 operands, f32 accumulation.
            y = jnp.dot(h.astype(jnp.bfloat16), w,
                        preferred_element_type=jnp.float32) + b[...]
            y = jnp.maximum(y, 0.0)                           # ReLU
            # BatchNorm1d, training-mode batch stats (biased variance),
            # single pass over y: var = E[y^2] - mean^2 (clamped at 0).
            mean = jnp.sum(y, axis=0, keepdims=True) * inv_batch
            mean_sq = jnp.sum(y * y, axis=0, keepdims=True) * inv_batch
            var = jnp.maximum(mean_sq - mean * mean, 0.0)
            scale = gamma[...] * jax.lax.rsqrt(var + BN_EPS)
            h = (y - mean) * scale + beta[...]                # fused MAD tail

        # Final plain Linear.
        slot = num_blocks % 2
        w_copy(num_blocks, slot).wait()
        din, dout = dims_p[num_blocks], dims_p[num_blocks + 1]
        b_out = small[-1]
        w = wbuf[slot, :din, :dout]
        o_ref[...] = jnp.dot(h.astype(jnp.bfloat16), w,
                             preferred_element_type=jnp.float32) + b_out[...]

    return kernel


def init_mlp_params(key, dim_in, num_nodes, dim_out):
    """Deterministic init matching the PyTorch module's shapes.

    Linear weights: kaiming_normal_(nonlinearity='relu') -> N(0, sqrt(2/fan_in)).
    Linear biases:  U(-1/sqrt(fan_in), 1/sqrt(fan_in))  (PyTorch default).
    BatchNorm1d:    gamma=1, beta=0.
    Weights stored as (d_in, d_out) (transpose of PyTorch's (d_out, d_in)).
    """
    dims = [dim_in] + list(num_nodes)
    params = {"blocks": []}
    for d_in, d_out in zip(dims[:-1], dims[1:]):
        key, kw, kb = jax.random.split(key, 3)
        w = jax.random.normal(kw, (d_in, d_out), jnp.float32) * jnp.sqrt(2.0 / d_in)
        bound = 1.0 / jnp.sqrt(float(d_in))
        b = jax.random.uniform(kb, (1, d_out), jnp.float32, -bound, bound)
        gamma = jnp.ones((1, d_out), jnp.float32)
        beta = jnp.zeros((1, d_out), jnp.float32)
        params["blocks"].append((w, b, gamma, beta))
    # Final Linear keeps PyTorch default init (kaiming only on DenseBlocks).
    d_in = dims[-1]
    key, kw, kb = jax.random.split(key, 3)
    bound = 1.0 / jnp.sqrt(float(d_in))
    w_out = jax.random.uniform(kw, (d_in, dim_out), jnp.float32, -bound, bound)
    b_out = jax.random.uniform(kb, (1, dim_out), jnp.float32, -bound, bound)
    params["out"] = (w_out, b_out)
    return params


def prepare_params(params):
    """One-time layout plumbing (off the per-call hot path).

    Pads every feature axis to a lane-dense multiple of 128 and casts the
    weight matrices to bf16; gamma is padded with 1s and everything else with
    0s so padded columns stay exactly 0 through every block.
    """
    blocks = params["blocks"]
    w_out, b_out = params["out"]
    dims = ([blocks[0][0].shape[0]] if blocks else [w_out.shape[0]])
    dims += [w.shape[1] for (w, _, _, _) in blocks] + [w_out.shape[1]]
    dims_p = [_round_up(d, LANE) for d in dims]

    weights, smalls = [], []
    prev_p = dims_p[0]
    for (w, b, gamma, beta), d_out_p in zip(blocks, dims_p[1:]):
        weights.append(_pad_2d(w, prev_p, d_out_p).astype(jnp.bfloat16))
        smalls += [
            _pad_2d(b, 1, d_out_p),
            _pad_2d(gamma, 1, d_out_p, value=1.0),
            _pad_2d(beta, 1, d_out_p),
        ]
        prev_p = d_out_p
    weights.append(_pad_2d(w_out, prev_p, dims_p[-1]).astype(jnp.bfloat16))
    smalls.append(_pad_2d(b_out, 1, dims_p[-1]))
    return {"weights": weights, "smalls": smalls}
    # TODO(synk): optionally quantize weights to int8 (+per-column scales) on
    # v5e/v6e (MXU int paths) or fp8 on v7x to halve weight HBM bytes again.


@functools.partial(jax.jit, static_argnums=(2,))
def mlp_forward(x, packed, dim_out):
    weights = packed["weights"]
    smalls = packed["smalls"]
    batch = x.shape[0]
    dims_p = [weights[0].shape[0]] + [w.shape[1] for w in weights]
    num_layers = len(weights)
    max_in = max(w.shape[0] for w in weights)
    max_out = max(w.shape[1] for w in weights)

    # Per-call layout work is only padding x (params were prepared once).
    x_p = _pad_2d(x, batch, dims_p[0])

    # Advisory cost estimate so XLA schedules the surrounding pad/slice well.
    flops = sum(2 * batch * w.shape[0] * w.shape[1] for w in weights)
    flops += sum(8 * batch * w.shape[1] for w in weights[:-1])   # ReLU + BN
    weight_bytes = sum(w.size * w.dtype.itemsize for w in weights)
    small_bytes = sum(s.size * s.dtype.itemsize for s in smalls)
    io_bytes = x_p.size * 4 + batch * dims_p[-1] * 4
    cost = pl.CostEstimate(flops=flops, transcendentals=0,
                           bytes_accessed=weight_bytes + small_bytes + io_bytes)

    # VMEM footprint: x + small params + output + ~2 live (B, Dmax) f32
    # activations + the 2-slot bf16 weight scratch (weights stream from HBM).
    act_bytes = 2 * batch * max(dims_p) * 4
    scratch_bytes = 2 * max_in * max_out * 2
    footprint = (x_p.size * 4 + small_bytes + batch * dims_p[-1] * 4
                 + act_bytes + scratch_bytes)

    vmem = pl.BlockSpec(memory_space=pltpu.MemorySpace.VMEM)
    hbm = pl.BlockSpec(memory_space=pl.ANY)

    out_p = pl.pallas_call(
        _make_fused_mlp_kernel(batch, tuple(dims_p)),
        out_shape=jax.ShapeDtypeStruct((batch, dims_p[-1]), jnp.float32),
        in_specs=[vmem] + [hbm] * num_layers + [vmem] * len(smalls),
        out_specs=vmem,
        scratch_shapes=[
            pltpu.VMEM((2, max_in, max_out), jnp.bfloat16),   # weight 2-slot
            pltpu.SemaphoreType.DMA((2,)),
        ],
        compiler_params=pltpu.CompilerParams(
            vmem_limit_bytes=_vmem_limit_bytes(footprint)),
        cost_estimate=cost,
    )(x_p, *weights, *smalls)

    # TODO(synk): when B grows, tile the batch over a grid (cross-tile BN
    # sum/sum-sq reduction in VMEM scratch, normalize in a second pass) and
    # shard the batch axis over v7x's 2 TensorCores; the current single-block
    # path keeps training-mode BN stats exact for small B.
    return out_p[:, :dim_out]


def mlp_reference(x, params):
    """Pure-JAX reference using the same bf16-operand matmul as the kernel."""
    def bf16_dot(a, b):
        return jnp.dot(a.astype(jnp.bfloat16), b.astype(jnp.bfloat16),
                       preferred_element_type=jnp.float32)

    h = x
    for (w, b, gamma, beta) in params["blocks"]:
        y = jnp.maximum(bf16_dot(h, w) + b, 0.0)
        mean = jnp.mean(y, axis=0, keepdims=True)
        y_c = y - mean
        var = jnp.mean(y_c * y_c, axis=0, keepdims=True)
        h = y_c * (gamma * jax.lax.rsqrt(var + BN_EPS)) + beta
    w_out, b_out = params["out"]
    return bf16_dot(h, w_out) + b_out


if __name__ == "__main__":
    # Small shapes implied by the module: MLP(dim_in=16, num_nodes=[32, 32], dim_out=8)
    batch, dim_in, num_nodes, dim_out = 8, 16, [32, 32], 8

    key = jax.random.PRNGKey(0)
    key, kx = jax.random.split(key)
    x = jax.random.normal(kx, (batch, dim_in), jnp.float32)
    params = init_mlp_params(key, dim_in, num_nodes, dim_out)
    packed = prepare_params(params)       # one-time pad/cast, off the hot path

    out = mlp_forward(x, packed, dim_out)
    jax.block_until_ready(out)

    ref = mlp_reference(x, params)
    assert out.shape == (batch, dim_out)
    assert jnp.allclose(out, ref, atol=5e-3, rtol=5e-3), "mismatch vs reference"

    print("KERNEL_OK")
</pallas_src>

<mosaic_0001>
module attributes {stable_mosaic.version = 11 : i64} {
  func.func @kernel(%arg0: memref<8x128xf32, #tpu.memory_space<vmem>>, %arg1: memref<128x128xbf16, #tpu.memory_space<any>>, %arg2: memref<128x128xbf16, #tpu.memory_space<any>>, %arg3: memref<128x128xbf16, #tpu.memory_space<any>>, %arg4: memref<1x128xf32, #tpu.memory_space<vmem>>, %arg5: memref<1x128xf32, #tpu.memory_space<vmem>>, %arg6: memref<1x128xf32, #tpu.memory_space<vmem>>, %arg7: memref<1x128xf32, #tpu.memory_space<vmem>>, %arg8: memref<1x128xf32, #tpu.memory_space<vmem>>, %arg9: memref<1x128xf32, #tpu.memory_space<vmem>>, %arg10: memref<1x128xf32, #tpu.memory_space<vmem>>, %arg11: memref<8x128xf32, #tpu.memory_space<vmem>>, %arg12: memref<2x128x128xbf16, #tpu.memory_space<vmem>>, %arg13: memref<2x!tpu.dma_semaphore, #tpu.memory_space<semaphore_mem>>) attributes {dimension_semantics = [], scalar_prefetch = 0 : i64, scratch_operands = 2 : i64, tpu.core_type = #tpu.core_type<tc>} {
    %c0_i32 = arith.constant 0 : i32
    %c0_i32_0 = arith.constant 0 : i32
    %c0_i32_1 = arith.constant 0 : i32
    %c0_i32_2 = arith.constant 0 : i32
    %0 = tpu.memref_slice %arg12[%c0_i32, %c0_i32_1, %c0_i32_2] : memref<2x128x128xbf16, #tpu.memory_space<vmem>> -> memref<1x128x128xbf16, #tpu.memory_space<vmem>>
    %1 = tpu.memref_squeeze %0 : memref<1x128x128xbf16, #tpu.memory_space<vmem>> -> memref<128x128xbf16, #tpu.memory_space<vmem>>
    %2 = tpu.memref_slice %arg13[%c0_i32_0] : memref<2x!tpu.dma_semaphore, #tpu.memory_space<semaphore_mem>> -> memref<1x!tpu.dma_semaphore, #tpu.memory_space<semaphore_mem>>
    %3 = tpu.memref_squeeze %2 : memref<1x!tpu.dma_semaphore, #tpu.memory_space<semaphore_mem>> -> memref<!tpu.dma_semaphore, #tpu.memory_space<semaphore_mem>>
    tpu.enqueue_dma source(%arg1 : memref<128x128xbf16, #tpu.memory_space<any>>) target(%1 : memref<128x128xbf16, #tpu.memory_space<vmem>>) target_semaphore(%3 : memref<!tpu.dma_semaphore, #tpu.memory_space<semaphore_mem>>)
    %c0 = arith.constant 0 : index
    %c0_3 = arith.constant 0 : index
    %4 = vector.load %arg0[%c0, %c0_3] : memref<8x128xf32, #tpu.memory_space<vmem>>, vector<8x128xf32>
    %c0_i32_4 = arith.constant 0 : i32
    %c0_i32_5 = arith.constant 0 : i32
    %c0_i32_6 = arith.constant 0 : i32
    %c0_i32_7 = arith.constant 0 : i32
    %5 = tpu.memref_slice %arg12[%c0_i32_4, %c0_i32_6, %c0_i32_7] : memref<2x128x128xbf16, #tpu.memory_space<vmem>> -> memref<1x128x128xbf16, #tpu.memory_space<vmem>>
    %6 = tpu.memref_squeeze %5 : memref<1x128x128xbf16, #tpu.memory_space<vmem>> -> memref<128x128xbf16, #tpu.memory_space<vmem>>
    %7 = tpu.memref_slice %arg13[%c0_i32_5] : memref<2x!tpu.dma_semaphore, #tpu.memory_space<semaphore_mem>> -> memref<1x!tpu.dma_semaphore, #tpu.memory_space<semaphore_mem>>
    %8 = tpu.memref_squeeze %7 : memref<1x!tpu.dma_semaphore, #tpu.memory_space<semaphore_mem>> -> memref<!tpu.dma_semaphore, #tpu.memory_space<semaphore_mem>>
    tpu.wait_dma2 semaphore(%8 : memref<!tpu.dma_semaphore, #tpu.memory_space<semaphore_mem>>) src(%arg1 : memref<128x128xbf16, #tpu.memory_space<any>>) dst(%6 : memref<128x128xbf16, #tpu.memory_space<vmem>>)
    %c1_i32 = arith.constant 1 : i32
    %c1_i32_8 = arith.constant 1 : i32
    %c0_i32_9 = arith.constant 0 : i32
    %c0_i32_10 = arith.constant 0 : i32
    %9 = tpu.memref_slice %arg12[%c1_i32, %c0_i32_9, %c0_i32_10] : memref<2x128x128xbf16, #tpu.memory_space<vmem>> -> memref<1x128x128xbf16, #tpu.memory_space<vmem>>
    %10 = tpu.memref_squeeze %9 : memref<1x128x128xbf16, #tpu.memory_space<vmem>> -> memref<128x128xbf16, #tpu.memory_space<vmem>>
    %11 = tpu.memref_slice %arg13[%c1_i32_8] : memref<2x!tpu.dma_semaphore, #tpu.memory_space<semaphore_mem>> -> memref<1x!tpu.dma_semaphore, #tpu.memory_space<semaphore_mem>>
    %12 = tpu.memref_squeeze %11 : memref<1x!tpu.dma_semaphore, #tpu.memory_space<semaphore_mem>> -> memref<!tpu.dma_semaphore, #tpu.memory_space<semaphore_mem>>
    tpu.enqueue_dma source(%arg2 : memref<128x128xbf16, #tpu.memory_space<any>>) target(%10 : memref<128x128xbf16, #tpu.memory_space<vmem>>) target_semaphore(%12 : memref<!tpu.dma_semaphore, #tpu.memory_space<semaphore_mem>>)
    %c0_11 = arith.constant 0 : index
    %c0_12 = arith.constant 0 : index
    %c0_13 = arith.constant 0 : index
    %13 = vector.load %arg12[%c0_11, %c0_12, %c0_13] : memref<2x128x128xbf16, #tpu.memory_space<vmem>>, vector<1x128x128xbf16>
    %14 = vector.shape_cast %13 : vector<1x128x128xbf16> to vector<128x128xbf16>
    %15 = arith.truncf %4 : vector<8x128xf32> to vector<8x128xbf16>
    %cst = arith.constant dense<0.000000e+00> : vector<8x128xf32>
    %16 = tpu.matmul %15, %14, %cst {dimension_numbers = #tpu.dot_dimension_numbers<[1], [0], [0], [1], [0, 0, 1, 1], [], []>} : vector<8x128xbf16>, vector<128x128xbf16>, vector<8x128xf32> -> vector<8x128xf32>
    %c0_14 = arith.constant 0 : index
    %c0_15 = arith.constant 0 : index
    %17 = vector.load %arg4[%c0_14, %c0_15] : memref<1x128xf32, #tpu.memory_space<vmem>>, vector<1x128xf32>
    %18 = vector.broadcast %17 : vector<1x128xf32> to vector<8x128xf32>
    %19 = arith.addf %16, %18 : vector<8x128xf32>
    %cst_16 = arith.constant 0.000000e+00 : f32
    %20 = vector.broadcast %cst_16 : f32 to vector<8x128xf32>
    %21 = arith.maximumf %19, %20 : vector<8x128xf32>
    %cst_17 = arith.constant dense<0.000000e+00> : vector<128xf32>
    %22 = vector.multi_reduction <add>, %21, %cst_17 [0] : vector<8x128xf32> to vector<128xf32>
    %23 = vector.shape_cast %22 : vector<128xf32> to vector<1x128xf32>
    %cst_18 = arith.constant 1.250000e-01 : f32
    %24 = vector.broadcast %cst_18 : f32 to vector<1x128xf32>
    %25 = arith.mulf %23, %24 : vector<1x128xf32>
    %26 = arith.mulf %21, %21 : vector<8x128xf32>
    %cst_19 = arith.constant dense<0.000000e+00> : vector<128xf32>
    %27 = vector.multi_reduction <add>, %26, %cst_19 [0] : vector<8x128xf32> to vector<128xf32>
    %28 = vector.shape_cast %27 : vector<128xf32> to vector<1x128xf32>
    %cst_20 = arith.constant 1.250000e-01 : f32
    %29 = vector.broadcast %cst_20 : f32 to vector<1x128xf32>
    %30 = arith.mulf %28, %29 : vector<1x128xf32>
    %31 = arith.mulf %25, %25 : vector<1x128xf32>
    %32 = arith.subf %30, %31 : vector<1x128xf32>
    %cst_21 = arith.constant 0.000000e+00 : f32
    %33 = vector.broadcast %cst_21 : f32 to vector<1x128xf32>
    %34 = arith.maximumf %32, %33 : vector<1x128xf32>
    %c0_22 = arith.constant 0 : index
    %c0_23 = arith.constant 0 : index
    %35 = vector.load %arg5[%c0_22, %c0_23] : memref<1x128xf32, #tpu.memory_space<vmem>>, vector<1x128xf32>
    %cst_24 = arith.constant 9.99999974E-6 : f32
    %36 = vector.broadcast %cst_24 : f32 to vector<1x128xf32>
    %37 = arith.addf %34, %36 : vector<1x128xf32>
    %38 = math.rsqrt %37 : vector<1x128xf32>
    %39 = arith.mulf %35, %38 : vector<1x128xf32>
    %40 = vector.broadcast %25 : vector<1x128xf32> to vector<8x128xf32>
    %41 = arith.subf %21, %40 : vector<8x128xf32>
    %42 = vector.broadcast %39 : vector<1x128xf32> to vector<8x128xf32>
    %43 = arith.mulf %41, %42 : vector<8x128xf32>
    %c0_25 = arith.constant 0 : index
    %c0_26 = arith.constant 0 : index
    %44 = vector.load %arg6[%c0_25, %c0_26] : memref<1x128xf32, #tpu.memory_space<vmem>>, vector<1x128xf32>
    %45 = vector.broadcast %44 : vector<1x128xf32> to vector<8x128xf32>
    %46 = arith.addf %43, %45 : vector<8x128xf32>
    %c1_i32_27 = arith.constant 1 : i32
    %c1_i32_28 = arith.constant 1 : i32
    %c0_i32_29 = arith.constant 0 : i32
    %c0_i32_30 = arith.constant 0 : i32
    %47 = tpu.memref_slice %arg12[%c1_i32_27, %c0_i32_29, %c0_i32_30] : memref<2x128x128xbf16, #tpu.memory_space<vmem>> -> memref<1x128x128xbf16, #tpu.memory_space<vmem>>
    %48 = tpu.memref_squeeze %47 : memref<1x128x128xbf16, #tpu.memory_space<vmem>> -> memref<128x128xbf16, #tpu.memory_space<vmem>>
    %49 = tpu.memref_slice %arg13[%c1_i32_28] : memref<2x!tpu.dma_semaphore, #tpu.memory_space<semaphore_mem>> -> memref<1x!tpu.dma_semaphore, #tpu.memory_space<semaphore_mem>>
    %50 = tpu.memref_squeeze %49 : memref<1x!tpu.dma_semaphore, #tpu.memory_space<semaphore_mem>> -> memref<!tpu.dma_semaphore, #tpu.memory_space<semaphore_mem>>
    tpu.wait_dma2 semaphore(%50 : memref<!tpu.dma_semaphore, #tpu.memory_space<semaphore_mem>>) src(%arg2 : memref<128x128xbf16, #tpu.memory_space<any>>) dst(%48 : memref<128x128xbf16, #tpu.memory_space<vmem>>)
    %c0_i32_31 = arith.constant 0 : i32
    %c0_i32_32 = arith.constant 0 : i32
    %c0_i32_33 = arith.constant 0 : i32
    %c0_i32_34 = arith.constant 0 : i32
    %51 = tpu.memref_slice %arg12[%c0_i32_31, %c0_i32_33, %c0_i32_34] : memref<2x128x128xbf16, #tpu.memory_space<vmem>> -> memref<1x128x128xbf16, #tpu.memory_space<vmem>>
    %52 = tpu.memref_squeeze %51 : memref<1x128x128xbf16, #tpu.memory_space<vmem>> -> memref<128x128xbf16, #tpu.memory_space<vmem>>
    %53 = tpu.memref_slice %arg13[%c0_i32_32] : memref<2x!tpu.dma_semaphore, #tpu.memory_space<semaphore_mem>> -> memref<1x!tpu.dma_semaphore, #tpu.memory_space<semaphore_mem>>
    %54 = tpu.memref_squeeze %53 : memref<1x!tpu.dma_semaphore, #tpu.memory_space<semaphore_mem>> -> memref<!tpu.dma_semaphore, #tpu.memory_space<semaphore_mem>>
    tpu.enqueue_dma source(%arg3 : memref<128x128xbf16, #tpu.memory_space<any>>) target(%52 : memref<128x128xbf16, #tpu.memory_space<vmem>>) target_semaphore(%54 : memref<!tpu.dma_semaphore, #tpu.memory_space<semaphore_mem>>)
    %c1 = arith.constant 1 : index
    %c0_35 = arith.constant 0 : index
    %c0_36 = arith.constant 0 : index
    %55 = vector.load %arg12[%c1, %c0_35, %c0_36] : memref<2x128x128xbf16, #tpu.memory_space<vmem>>, vector<1x128x128xbf16>
    %56 = vector.shape_cast %55 : vector<1x128x128xbf16> to vector<128x128xbf16>
    %57 = arith.truncf %46 : vector<8x128xf32> to vector<8x128xbf16>
    %cst_37 = arith.constant dense<0.000000e+00> : vector<8x128xf32>
    %58 = tpu.matmul %57, %56, %cst_37 {dimension_numbers = #tpu.dot_dimension_numbers<[1], [0], [0], [1], [0, 0, 1, 1], [], []>} : vector<8x128xbf16>, vector<128x128xbf16>, vector<8x128xf32> -> vector<8x128xf32>
    %c0_38 = arith.constant 0 : index
    %c0_39 = arith.constant 0 : index
    %59 = vector.load %arg7[%c0_38, %c0_39] : memref<1x128xf32, #tpu.memory_space<vmem>>, vector<1x128xf32>
    %60 = vector.broadcast %59 : vector<1x128xf32> to vector<8x128xf32>
    %61 = arith.addf %58, %60 : vector<8x128xf32>
    %cst_40 = arith.constant 0.000000e+00 : f32
    %62 = vector.broadcast %cst_40 : f32 to vector<8x128xf32>
    %63 = arith.maximumf %61, %62 : vector<8x128xf32>
    %cst_41 = arith.constant dense<0.000000e+00> : vector<128xf32>
    %64 = vector.multi_reduction <add>, %63, %cst_41 [0] : vector<8x128xf32> to vector<128xf32>
    %65 = vector.shape_cast %64 : vector<128xf32> to vector<1x128xf32>
    %cst_42 = arith.constant 1.250000e-01 : f32
    %66 = vector.broadcast %cst_42 : f32 to vector<1x128xf32>
    %67 = arith.mulf %65, %66 : vector<1x128xf32>
    %68 = arith.mulf %63, %63 : vector<8x128xf32>
    %cst_43 = arith.constant dense<0.000000e+00> : vector<128xf32>
    %69 = vector.multi_reduction <add>, %68, %cst_43 [0] : vector<8x128xf32> to vector<128xf32>
    %70 = vector.shape_cast %69 : vector<128xf32> to vector<1x128xf32>
    %cst_44 = arith.constant 1.250000e-01 : f32
    %71 = vector.broadcast %cst_44 : f32 to vector<1x128xf32>
    %72 = arith.mulf %70, %71 : vector<1x128xf32>
    %73 = arith.mulf %67, %67 : vector<1x128xf32>
    %74 = arith.subf %72, %73 : vector<1x128xf32>
    %cst_45 = arith.constant 0.000000e+00 : f32
    %75 = vector.broadcast %cst_45 : f32 to vector<1x128xf32>
    %76 = arith.maximumf %74, %75 : vector<1x128xf32>
    %c0_46 = arith.constant 0 : index
    %c0_47 = arith.constant 0 : index
    %77 = vector.load %arg8[%c0_46, %c0_47] : memref<1x128xf32, #tpu.memory_space<vmem>>, vector<1x128xf32>
    %cst_48 = arith.constant 9.99999974E-6 : f32
    %78 = vector.broadcast %cst_48 : f32 to vector<1x128xf32>
    %79 = arith.addf %76, %78 : vector<1x128xf32>
    %80 = math.rsqrt %79 : vector<1x128xf32>
    %81 = arith.mulf %77, %80 : vector<1x128xf32>
    %82 = vector.broadcast %67 : vector<1x128xf32> to vector<8x128xf32>
    %83 = arith.subf %63, %82 : vector<8x128xf32>
    %84 = vector.broadcast %81 : vector<1x128xf32> to vector<8x128xf32>
    %85 = arith.mulf %83, %84 : vector<8x128xf32>
    %c0_49 = arith.constant 0 : index
    %c0_50 = arith.constant 0 : index
    %86 = vector.load %arg9[%c0_49, %c0_50] : memref<1x128xf32, #tpu.memory_space<vmem>>, vector<1x128xf32>
    %87 = vector.broadcast %86 : vector<1x128xf32> to vector<8x128xf32>
    %88 = arith.addf %85, %87 : vector<8x128xf32>
    %c0_i32_51 = arith.constant 0 : i32
    %c0_i32_52 = arith.constant 0 : i32
    %c0_i32_53 = arith.constant 0 : i32
    %c0_i32_54 = arith.constant 0 : i32
    %89 = tpu.memref_slice %arg12[%c0_i32_51, %c0_i32_53, %c0_i32_54] : memref<2x128x128xbf16, #tpu.memory_space<vmem>> -> memref<1x128x128xbf16, #tpu.memory_space<vmem>>
    %90 = tpu.memref_squeeze %89 : memref<1x128x128xbf16, #tpu.memory_space<vmem>> -> memref<128x128xbf16, #tpu.memory_space<vmem>>
    %91 = tpu.memref_slice %arg13[%c0_i32_52] : memref<2x!tpu.dma_semaphore, #tpu.memory_space<semaphore_mem>> -> memref<1x!tpu.dma_semaphore, #tpu.memory_space<semaphore_mem>>
    %92 = tpu.memref_squeeze %91 : memref<1x!tpu.dma_semaphore, #tpu.memory_space<semaphore_mem>> -> memref<!tpu.dma_semaphore, #tpu.memory_space<semaphore_mem>>
    tpu.wait_dma2 semaphore(%92 : memref<!tpu.dma_semaphore, #tpu.memory_space<semaphore_mem>>) src(%arg3 : memref<128x128xbf16, #tpu.memory_space<any>>) dst(%90 : memref<128x128xbf16, #tpu.memory_space<vmem>>)
    %c0_55 = arith.constant 0 : index
    %c0_56 = arith.constant 0 : index
    %c0_57 = arith.constant 0 : index
    %93 = vector.load %arg12[%c0_55, %c0_56, %c0_57] : memref<2x128x128xbf16, #tpu.memory_space<vmem>>, vector<1x128x128xbf16>
    %94 = vector.shape_cast %93 : vector<1x128x128xbf16> to vector<128x128xbf16>
    %95 = arith.truncf %88 : vector<8x128xf32> to vector<8x128xbf16>
    %cst_58 = arith.constant dense<0.000000e+00> : vector<8x128xf32>
    %96 = tpu.matmul %95, %94, %cst_58 {dimension_numbers = #tpu.dot_dimension_numbers<[1], [0], [0], [1], [0, 0, 1, 1], [], []>} : vector<8x128xbf16>, vector<128x128xbf16>, vector<8x128xf32> -> vector<8x128xf32>
    %c0_59 = arith.constant 0 : index
    %c0_60 = arith.constant 0 : index
    %97 = vector.load %arg10[%c0_59, %c0_60] : memref<1x128xf32, #tpu.memory_space<vmem>>, vector<1x128xf32>
    %98 = vector.broadcast %97 : vector<1x128xf32> to vector<8x128xf32>
    %99 = arith.addf %96, %98 : vector<8x128xf32>
    %c0_61 = arith.constant 0 : index
    %c0_62 = arith.constant 0 : index
    %100 = vector.load %arg11[%c0_61, %c0_62] : memref<8x128xf32, #tpu.memory_space<vmem>>, vector<8x128xf32>
    tpu.vector_store %arg11[%c0_61, %c0_62], %99 {strides = array<i32>} : memref<8x128xf32, #tpu.memory_space<vmem>>, vector<8x128xf32>,
    return
  }
}

</mosaic_0001>

<bundles_post_ra>
// kernel: mlp_forward.1
= control target key start
LH: loop header
LB: loop body
LE: loop exit
PB: predicated region body
PF: predicated region fallthrough
CT: control target
= control target key end

     0   :  { %16 = vsyncpa [#allocation5], 0  ;;  %s551_s19 = smov [#allocation2]   ;;  %s761_s0 = inlined_call_operand.vmem [shape: f32[8,128], index: 0, kind: input, shape index: {}]   ;;  %s762_s1 = inlined_call_operand.hbm [shape: bf16[128,128], index: 1, kind: input, shape index: {}]   ;;  %s763_s2 = inlined_call_operand.hbm [shape: bf16[128,128], index: 2, kind: input, shape index: {}]   ;;  %s764_s3 = inlined_call_operand.hbm [shape: bf16[128,128], index: 3, kind: input, shape index: {}]   ;;  %s765_s4 = inlined_call_operand.vmem [shape: f32[1,128], index: 4, kind: input, shape index: {}]   ;;  %s766_s5 = inlined_call_operand.vmem [shape: f32[1,128], index: 5, kind: input, shape index: {}]   ;;  %s767_s6 = inlined_call_operand.vmem [shape: f32[1,128], index: 6, kind: input, shape index: {}]   ;;  %s768_s7 = inlined_call_operand.vmem [shape: f32[1,128], index: 7, kind: input, shape index: {}]   ;;  %s769_s8 = inlined_call_operand.vmem [shape: f32[1,128], index: 8, kind: input, shape index: {}]   ;;  %s770_s9 = inlined_call_operand.vmem [shape: f32[1,128], index: 9, kind: input, shape index: {}]   ;;  %s771_s10 = inlined_call_operand.vmem [shape: f32[1,128], index: 10, kind: input, shape index: {}]   ;;  %s772_s11 = inlined_call_operand.hbm [shape: f32[8,128], index: 11, kind: output, shape index: {}]  }
   0x1   :  { %v619_v0 = vld [vmem:[%s761_s0] sm:$0xff]  ;;  %s41_s20 = sshll.u32 %s551_s19, 4  ;;  %s455_s23 = scalar_lea.hbm %s762_s1, 1024  ;;  %s621_s20 = int_to_ptr.vmem [resolvable:$true] %s41_s20 }
   0x2   :  { %p456_p0 = scmp.ne.s32.totalorder %s762_s1, %s455_s23  ;;  %p459_p1 = scmp.lt.u32.totalorder %s455_s23, %s762_s1 }
   0x4   :  { %p461_p2 = pnand %p459_p1, %p456_p0 }
   0x6   :  { %464 = shalt.err (!%p461_p2)  }
   0x7   :  { %s465_s0 = scalar_lea.vmem %s621_s20, 1024  ;;  %s469_s29 = scalar_lea.vmem %s621_s20, 2048 }
   0x8   :  { %p634_p3 = scmp.ne.s32.totalorder %s621_s20, %s465_s0  ;;  %p470_p4 = scmp.lt.s32.totalorder %s621_s20, %s621_s20 }
   0x9   :  { %p471_p5 = scmp.lt.s32.totalorder %s469_s29, %s465_s0 }
   0xb   :  { %p641_p6 = por %p471_p5, %p470_p4 }
   0xd   :  { %p473_p7 = pnand %p641_p6, %p634_p3 }
   0xf   :  { %476 = shalt.err (!%p473_p7)  }
  0x10   :  { %44 = dma.hbm_to_vmem [thread:$0]  %s762_s1, 1024, %s621_s20, [#allocation3] }
  0x11   :  { %543 = dma.done.wait [#allocation3], 1024 }
  0x12   :  { %544 = vsyncadd [#allocation3], 4294966272  ;;  %s552_s14 = smov [#allocation2 + $0x40]   ;;  %v553_v1 = vmov 0.0   ;;  %vm554_vm0 = vmmov 0   ;;  %s477_s18 = scalar_lea.hbm %s763_s2, 1024 }
  0x13   :  { %s59_s15 = sshll.u32 %s552_s14, 4  ;;  %386 = vmatprep.subr.bf16.mxu0 %v553_v1  ;;  %402 = vmatprep.mubr.msk.bf16.mxu0 %vm554_vm0, %v553_v1  ;;  %p478_p8 = scmp.ne.s32.totalorder %s763_s2, %s477_s18  ;;  %s60_s15 = int_to_ptr.vmem [resolvable:$true] %s59_s15 }
  0x14   :  { %p481_p9 = scmp.lt.u32.totalorder %s477_s18, %s763_s2 }
  0x16   :  { %p483_p10 = pnand %p481_p9, %p478_p8 }
  0x18   :  { %486 = shalt.err (!%p483_p10)  }
  0x19   :  { %s487_s23 = scalar_lea.vmem %s60_s15, 1024  ;;  %p492_p12 = scmp.lt.s32.totalorder %s60_s15, %s621_s20 }
  0x1a   :  { %p488_p11 = scmp.ne.s32.totalorder %s60_s15, %s487_s23  ;;  %p493_p13 = scmp.lt.s32.totalorder %s469_s29, %s487_s23 }
  0x1c   :  { %p494_p0 = por %p493_p13, %p492_p12 }
  0x1e   :  { %p495_p1 = pnand %p494_p0, %p488_p11 }
  0x20   :  { %498 = shalt.err (!%p495_p1)  }
  0x21   :  { %62 = dma.hbm_to_vmem [thread:$0]  %s763_s2, 1024, %s60_s15, [#allocation3 + $0x1]  ;;  %v71_v10 = vpack.c.bf16 %v619_v0, %v619_v0  ;;  %v352_v11 = vld [vmem:[%s765_s4] ss:$0 sm:$0xff]  ;;  %v144_v37 = vlaneseq }
  0x22   :  { %v63_v2 = vld [vmem:[#allocation2] sm:$0xff]  ;;  %v64_v3 = vld [vmem:[#allocation2 + $0x8] sm:$0xff]  ;;  %v65_v4 = vld [vmem:[#allocation2 + $0x10] sm:$0xff] }
  0x23   :  { %387 = vmatpush3.bf16.msra.mxu0 %v63_v2  ;;  %v66_v5 = vld [vmem:[#allocation2 + $0x18] sm:$0xff]  ;;  %v67_v6 = vld [vmem:[#allocation2 + $0x20] sm:$0xff]  ;;  %v68_v7 = vld [vmem:[#allocation2 + $0x28] sm:$0xff]  ;;  %v686_v38 = vshrl.u32 %v144_v37, 7 }
  0x24   :  { %388 = vmatprep.subr.bf16.mxu0 %v553_v1  ;;  %v69_v8 = vld [vmem:[#allocation2 + $0x30] sm:$0xff]  ;;  %v70_v9 = vld [vmem:[#allocation2 + $0x38] sm:$0xff] }
  0x25   :  { %v138_v39 = vld [vmem:[%s766_s5] sm:$0x1]  ;;  %v146_v40 = vsub.s32 0, %v686_v38 }
  0x26   :  { %v353_v45 = vld [vmem:[%s767_s6] ss:$0 sm:$0xff] }
  0x27   :  { %389 = vmatpush3.bf16.msra.mxu0 %v64_v3 }
  0x28   :  { %390 = vmatprep.subr.bf16.mxu0 %v553_v1 }
  0x2b   :  { %391 = vmatpush3.bf16.msra.mxu0 %v65_v4 }
  0x2c   :  { %392 = vmatprep.subr.bf16.mxu0 %v553_v1 }
  0x2f   :  { %393 = vmatpush3.bf16.msra.mxu0 %v66_v5 }
  0x30   :  { %394 = vmatprep.subr.bf16.mxu0 %v553_v1 }
  0x33   :  { %395 = vmatpush3.bf16.msra.mxu0 %v67_v6 }
  0x34   :  { %396 = vmatprep.subr.bf16.mxu0 %v553_v1 }
  0x37   :  { %397 = vmatpush3.bf16.msra.mxu0 %v68_v7 }
  0x38   :  { %398 = vmatprep.subr.bf16.mxu0 %v553_v1 }
  0x3b   :  { %399 = vmatpush3.bf16.msra.mxu0 %v69_v8 }
  0x3c   :  { %400 = vmatprep.subr.bf16.mxu0 %v553_v1 }
  0x3f   :  { %401 = vmatpush3.bf16.msra.mxu0 %v70_v9 }
  0x42   :  { %403 = vmatmul.mubr.bf16.vlgmr.msra.gmra.mrb[0].mxu0 %v71_v10 }
 0x115   :  { %v113_v12 = vpop.f32.mrb[0].mxu0 }
 0x116   :  { %v114_v13 = vadd.f32 %v352_v11, %v113_v12  ;;  %v404_v14 = vpop.f32.mrb[1].mxu0 }
 0x117   :  { %v116_v15 = vpop.f32.mrb[2].mxu0 }
 0x118   :  { %v119_v16 = vmax.f32 %v114_v13, 0.0  ;;  %v405_v17 = vpop.f32.mrb[3].mxu0 }
 0x11a   :  { %v120_v18 = vrot.slane %v119_v16, 4  ;;  %v127_v19 = vmul.f32 %v119_v16, %v119_v16 }
 0x11c   :  { %v121_v20 = vadd.f32 %v120_v18, %v119_v16  ;;  %v128_v21 = vrot.slane %v127_v19, 4 }
 0x11e   :  { %v122_v22 = vrot.slane %v121_v20, 2  ;;  %v129_v23 = vadd.f32 %v128_v21, %v127_v19 }
 0x120   :  { %v123_v24 = vadd.f32 %v122_v22, %v121_v20  ;;  %v130_v25 = vrot.slane %v129_v23, 2 }
 0x122   :  { %v124_v26 = vrot.slane %v123_v24, 1  ;;  %v131_v27 = vadd.f32 %v130_v25, %v129_v23 }
 0x124   :  { %v125_v28 = vadd.f32 %v124_v26, %v123_v24  ;;  %v132_v29 = vrot.slane %v131_v27, 1 }
 0x126   :  { %v126_v30 = vmul.f32 0.125, %v125_v28  ;;  %v133_v31 = vadd.f32 %v132_v29, %v131_v27 }
 0x128   :  { %v134_v32 = vmul.f32 0.125, %v133_v31  ;;  %v135_v33 = vmul.f32 %v126_v30, %v126_v30  ;;  %v142_v43 = vsub.f32 %v119_v16, %v126_v30 }
 0x12a   :  { %v136_v34 = vsub.f32 %v134_v32, %v135_v33 }
 0x12c   :  { %v137_v35 = vmax.f32 %v136_v34, 0.0 }
 0x12e   :  { %v139_v36 = vadd.f32 1e-05, %v137_v35 }
 0x130   :  { %451 = vrsqrt.f32 %v139_v36 }
 0x13a   :  { %v452_v41 = vpop.eup %451 }
 0x13b   :  { %v141_v42 = vmul.f32 %v452_v41, %v138_v39 }
 0x13d   :  { %v147_v44 = vrot.slane %v141_v42, %v146_v40 }
 0x13f   :  { %v149_v46 = vmul.f32 %v147_v44, %v142_v43 }
 0x141   :  { %v157_v47 = vadd.f32 %v353_v45, %v149_v46 }
 0x142   :  { %545 = dma.done.wait [#allocation3 + $0x1], 1024 }
 0x143   :  { %546 = vsyncadd [#allocation3 + $0x1], 4294966272  ;;  %406 = vmatprep.subr.bf16.mxu1 %v553_v1  ;;  %422 = vmatprep.mubr.msk.bf16.mxu1 %vm554_vm0, %v553_v1  ;;  %s499_s13 = scalar_lea.hbm %s764_s3, 1024 }
 0x144   :  { %p500_p2 = scmp.ne.s32.totalorder %s764_s3, %s499_s13  ;;  %p503_p4 = scmp.lt.u32.totalorder %s499_s13, %s764_s3 }
 0x146   :  { %p505_p5 = pnand %p503_p4, %p500_p2 }
 0x148   :  { %508 = shalt.err (!%p505_p5)  }
 0x149   :  { %520 = shalt.err (!%p473_p7)  }
 0x14a   :  { %170 = dma.hbm_to_vmem [thread:$0]  %s764_s3, 1024, %s621_s20, [#allocation3]  ;;  %v179_v56 = vpack.c.bf16 %v157_v47, %v157_v47  ;;  %v354_v57 = vld [vmem:[%s768_s7] ss:$0 sm:$0xff] }
 0x14b   :  { %v171_v48 = vld [vmem:[#allocation2 + $0x40] sm:$0xff]  ;;  %v172_v49 = vld [vmem:[#allocation2 + $0x48] sm:$0xff]  ;;  %v173_v50 = vld [vmem:[#allocation2 + $0x50] sm:$0xff] }
 0x14c   :  { %407 = vmatpush3.bf16.msra.mxu1 %v171_v48  ;;  %v174_v51 = vld [vmem:[#allocation2 + $0x58] sm:$0xff]  ;;  %v175_v52 = vld [vmem:[#allocation2 + $0x60] sm:$0xff]  ;;  %v176_v53 = vld [vmem:[#allocation2 + $0x68] sm:$0xff] }
 0x14d   :  { %408 = vmatprep.subr.bf16.mxu1 %v553_v1  ;;  %v177_v54 = vld [vmem:[#allocation2 + $0x70] sm:$0xff]  ;;  %v178_v55 = vld [vmem:[#allocation2 + $0x78] sm:$0xff] }
 0x14e   :  { %v246_v20 = vld [vmem:[%s769_s8] sm:$0x1] }
 0x14f   :  { %v355_v25 = vld [vmem:[%s770_s9] ss:$0 sm:$0xff] }
 0x150   :  { %409 = vmatpush3.bf16.msra.mxu1 %v172_v49 }
 0x151   :  { %410 = vmatprep.subr.bf16.mxu1 %v553_v1 }
 0x154   :  { %411 = vmatpush3.bf16.msra.mxu1 %v173_v50 }
 0x155   :  { %412 = vmatprep.subr.bf16.mxu1 %v553_v1 }
 0x158   :  { %413 = vmatpush3.bf16.msra.mxu1 %v174_v51 }
 0x159   :  { %414 = vmatprep.subr.bf16.mxu1 %v553_v1 }
 0x15c   :  { %415 = vmatpush3.bf16.msra.mxu1 %v175_v52 }
 0x15d   :  { %416 = vmatprep.subr.bf16.mxu1 %v553_v1 }
 0x160   :  { %417 = vmatpush3.bf16.msra.mxu1 %v176_v53 }
 0x161   :  { %418 = vmatprep.subr.bf16.mxu1 %v553_v1 }
 0x164   :  { %419 = vmatpush3.bf16.msra.mxu1 %v177_v54 }
 0x165   :  { %420 = vmatprep.subr.bf16.mxu1 %v553_v1 }
 0x168   :  { %421 = vmatpush3.bf16.msra.mxu1 %v178_v55 }
 0x16b   :  { %423 = vmatmul.mubr.bf16.vlgmr.msra.gmra.mrb[0].mxu1 %v179_v56 }
 0x23e   :  { %v221_v58 = vpop.f32.mrb[0].mxu1 }
 0x23f   :  { %v222_v59 = vadd.f32 %v354_v57, %v221_v58  ;;  %v424_v60 = vpop.f32.mrb[1].mxu1 }
 0x240   :  { %v224_v61 = vpop.f32.mrb[2].mxu1 }
 0x241   :  { %v227_v62 = vmax.f32 %v222_v59, 0.0  ;;  %v425_v63 = vpop.f32.mrb[3].mxu1 }
 0x243   :  { %v228_v0 = vrot.slane %v227_v62, 4  ;;  %v235_v2 = vmul.f32 %v227_v62, %v227_v62 }
 0x245   :  { %v229_v3 = vadd.f32 %v228_v0, %v227_v62  ;;  %v236_v4 = vrot.slane %v235_v2, 4 }
 0x247   :  { %v230_v5 = vrot.slane %v229_v3, 2  ;;  %v237_v6 = vadd.f32 %v236_v4, %v235_v2 }
 0x249   :  { %v231_v7 = vadd.f32 %v230_v5, %v229_v3  ;;  %v238_v8 = vrot.slane %v237_v6, 2 }
 0x24b   :  { %v232_v9 = vrot.slane %v231_v7, 1  ;;  %v239_v10 = vadd.f32 %v238_v8, %v237_v6 }
 0x24d   :  { %v233_v11 = vadd.f32 %v232_v9, %v231_v7  ;;  %v240_v12 = vrot.slane %v239_v10, 1 }
 0x24f   :  { %v234_v13 = vmul.f32 0.125, %v233_v11  ;;  %v241_v14 = vadd.f32 %v240_v12, %v239_v10 }
 0x251   :  { %v242_v15 = vmul.f32 0.125, %v241_v14  ;;  %v243_v16 = vmul.f32 %v234_v13, %v234_v13  ;;  %v250_v23 = vsub.f32 %v227_v62, %v234_v13 }
 0x253   :  { %v244_v17 = vsub.f32 %v242_v15, %v243_v16 }
 0x255   :  { %v245_v18 = vmax.f32 %v244_v17, 0.0 }
 0x257   :  { %v247_v19 = vadd.f32 1e-05, %v245_v18 }
 0x259   :  { %453 = vrsqrt.f32 %v247_v19 }
 0x263   :  { %v454_v21 = vpop.eup %453 }
 0x264   :  { %v249_v22 = vmul.f32 %v454_v21, %v246_v20 }
 0x266   :  { %v255_v24 = vrot.slane %v249_v22, %v146_v40 }
 0x268   :  { %v257_v26 = vmul.f32 %v255_v24, %v250_v23 }
 0x26a   :  { %v265_v27 = vadd.f32 %v355_v25, %v257_v26 }
 0x26b   :  { %547 = dma.done.wait [#allocation3], 1024 }
 0x26c   :  { %548 = vsyncadd [#allocation3], 4294966272  ;;  %426 = vmatprep.subr.bf16.mxu0 %v553_v1  ;;  %442 = vmatprep.mubr.msk.bf16.mxu0 %vm554_vm0, %v553_v1  ;;  %v268_v28 = vld [vmem:[#allocation2] sm:$0xff]  ;;  %v269_v29 = vld [vmem:[#allocation2 + $0x8] sm:$0xff]  ;;  %v276_v36 = vpack.c.bf16 %v265_v27, %v265_v27  ;;  %s555_s21 = smov [#allocation4]  }
 0x26d   :  { %427 = vmatpush3.bf16.msra.mxu0 %v268_v28  ;;  %v270_v30 = vld [vmem:[#allocation2 + $0x10] sm:$0xff]  ;;  %v271_v31 = vld [vmem:[#allocation2 + $0x18] sm:$0xff]  ;;  %v272_v32 = vld [vmem:[#allocation2 + $0x20] sm:$0xff]  ;;  %s331_s1 = sshll.u32 %s555_s21, 4  ;;  %s332_s1 = int_to_ptr.vmem [resolvable:$true] %s331_s1 }
 0x26e   :  { %428 = vmatprep.subr.bf16.mxu0 %v553_v1  ;;  %v273_v33 = vld [vmem:[#allocation2 + $0x28] sm:$0xff]  ;;  %v274_v34 = vld [vmem:[#allocation2 + $0x30] sm:$0xff]  ;;  %v275_v35 = vld [vmem:[#allocation2 + $0x38] sm:$0xff]  ;;  %s521_s22 = scalar_lea.vmem %s332_s1, 128  ;;  %p526_p6 = scmp.lt.s32.totalorder %s332_s1, %s332_s1 }
 0x26f   :  { %v356_v37 = vld [vmem:[%s771_s10] ss:$0 sm:$0xff]  ;;  %p522_p3 = scmp.ne.s32.totalorder %s332_s1, %s521_s22  ;;  %p527_p7 = scmp.lt.s32.totalorder %s521_s22, %s521_s22 }
 0x271   :  { %429 = vmatpush3.bf16.msra.mxu0 %v269_v29  ;;  %p528_p8 = por %p527_p7, %p526_p6 }
 0x272   :  { %430 = vmatprep.subr.bf16.mxu0 %v553_v1 }
 0x273   :  { %p529_p9 = pnand %p528_p8, %p522_p3 }
 0x275   :  { %431 = vmatpush3.bf16.msra.mxu0 %v270_v30 }
 0x276   :  { %432 = vmatprep.subr.bf16.mxu0 %v553_v1 }
 0x279   :  { %433 = vmatpush3.bf16.msra.mxu0 %v271_v31 }
 0x27a   :  { %434 = vmatprep.subr.bf16.mxu0 %v553_v1 }
 0x27d   :  { %435 = vmatpush3.bf16.msra.mxu0 %v272_v32 }
 0x27e   :  { %436 = vmatprep.subr.bf16.mxu0 %v553_v1 }
 0x281   :  { %437 = vmatpush3.bf16.msra.mxu0 %v273_v33 }
 0x282   :  { %438 = vmatprep.subr.bf16.mxu0 %v553_v1 }
 0x285   :  { %439 = vmatpush3.bf16.msra.mxu0 %v274_v34 }
 0x286   :  { %440 = vmatprep.subr.bf16.mxu0 %v553_v1 }
 0x289   :  { %441 = vmatpush3.bf16.msra.mxu0 %v275_v35 }
 0x28c   :  { %443 = vmatmul.mubr.bf16.vlgmr.msra.gmra.mrb[4].mxu0 %v276_v36 }
 0x35f   :  { %v318_v38 = vpop.f32.mrb[4].mxu0 }
 0x360   :  { %v319_v39 = vadd.f32 %v356_v37, %v318_v38  ;;  %v444_v40 = vpop.f32.mrb[5].mxu0 }
 0x361   :  { %v321_v41 = vpop.f32.mrb[6].mxu0 }
 0x362   :  { %324 = vst [vmem:[#allocation4] sm:$0xff] %v319_v39  ;;  %v445_v42 = vpop.f32.mrb[7].mxu0 }
 0x363   :  { %532 = shalt.err (!%p529_p9)
}
 0x364   :  { %s533_s10 = scalar_lea.hbm %s772_s11, 128 }
 0x365   :  { %p534_p10 = scmp.ne.s32.totalorder %s772_s11, %s533_s10  ;;  %p537_p11 = scmp.lt.u32.totalorder %s533_s10, %s772_s11 }
 0x367   :  { %p539_p12 = pnand %p537_p11, %p534_p10 }
 0x369   :  { %542 = shalt.err (!%p539_p12)
}
 0x36a   :  { %334 = dma.vmem_to_hbm [thread:$0]  %s332_s1, 128, %s772_s11, [#allocation5]  }
 0x36b   :  { %549 = dma.done.wait [#allocation5], 128  }
 0x36c   :  { %550 = vsyncadd [#allocation5], 4294967168 }
 0x36d   :  { %338 = vsyncpa [#allocation5], 1 }
 0x36e   :  { %339 = vsyncmov [#allocation3] }
 0x371   :  { %s340_s29 = vpop.sfrf %339 }
 0x372   :  { %p357_p13 = scmp.ne.s32.totalorder %s340_s29, 0 }
 0x374   :  { %344 = shalt.err (%p357_p13)  }
 0x375   :  { %346 = vsyncmov [#allocation3 + $0x1] }
 0x378   :  { %s347_s5 = vpop.sfrf %346 }
 0x379   :  { %p358_p0 = scmp.ne.s32.totalorder %s347_s5, 0 }
 0x37b   :  { %351 = shalt.err (%p358_p0)  }

</bundles_post_ra>
